<compile_context>
chip_gen: v6e
topology: v6e:2x2x1
jax: 0.10.0
libtpu: 0.0.40
codegen_flags: <defaults>
</compile_context>

<pallas_src>
import functools

import jax
import jax.numpy as jnp
from jax.experimental import pallas as pl
from jax.experimental.pallas import tpu as pltpu

DEFAULT_TILE_B = 2048   # sweep 1024-4096; per-tile working set stays < 2 MiB


def _round_up(n, m):
    return ((n + m - 1) // m) * m


def _orthogonal(key, shape, gain):
    """Deterministic orthogonal init (same spirit as torch.nn.init.orthogonal_)."""
    rows, cols = shape
    n = max(rows, cols)
    a = jax.random.normal(key, (n, n), dtype=jnp.float32)
    q, r = jnp.linalg.qr(a)
    d = jnp.diag(r)
    q = q * jnp.where(d == 0, 1.0, jnp.sign(d))[None, :]
    return (gain * q[:rows, :cols]).astype(jnp.float32)


def policy_kernel(x_ref, w1_ref, b1_ref, w2_ref, b2_ref, w3t_ref, b3t_ref,
                  out_ref):
    """Fused tanh-MLP (2 layers) + linear head for one batch tile.

    Output is stored transposed, shape (A_sub, tile_b): lane axis = batch tile,
    so the final store is lane-dense / unmasked and only A_sub sublanes of
    logits hit HBM.
    """
    x = x_ref[...]
    h1 = jnp.tanh(jnp.dot(x, w1_ref[...],
                          preferred_element_type=jnp.float32) + b1_ref[...])
    h2 = jnp.tanh(jnp.dot(h1, w2_ref[...],
                          preferred_element_type=jnp.float32) + b2_ref[...])
    # Head computed directly in transposed layout via an NT matmul:
    #   out[a, b] = sum_h w3t[a, h] * h2[b, h]
    logits_t = jax.lax.dot_general(
        w3t_ref[...], h2,
        dimension_numbers=(((1,), (1,)), ((), ())),
        preferred_element_type=jnp.float32) + b3t_ref[...]
    out_ref[...] = logits_t.astype(out_ref.dtype)


def _choose_tiling(batch, tile_target, min_grid_steps):
    """Balanced batch tiling: avoid a mostly-empty trailing tile."""
    n_tiles = max(pl.cdiv(batch, tile_target), 1)
    if min_grid_steps > 1 and batch >= min_grid_steps * 128:
        n_tiles = max(n_tiles, min_grid_steps)
    if n_tiles == 1:
        tile_b = _round_up(batch, 8)        # single full-extent block
    else:
        tile_b = _round_up(pl.cdiv(batch, n_tiles), 128)   # lane-dense tiles
    return n_tiles, tile_b, n_tiles * tile_b


@functools.partial(jax.jit, static_argnames=("tile_target", "min_grid_steps"))
def policy_network_logits(x, w1, b1, w2, b2, w3t, b3t, *,
                          tile_target=DEFAULT_TILE_B, min_grid_steps=1):
    """Action logits (B, num_actions).

    x: (B, D) f32.  w1: (D, H), b1: (1, H), w2: (H, H), b2: (1, H),
    w3t: (A, H) (PyTorch (out, in) layout for the head), b3t: (A, 1).
    Set min_grid_steps=2 on v7x (2 TensorCores/chip) for large batches.
    """
    B, D = x.shape
    H = w1.shape[1]
    A = w3t.shape[0]

    # Pad head rows to a sublane multiple only if needed (no-op for A=8).
    A_sub = _round_up(A, 8)
    if A_sub != A:
        w3t = jnp.pad(w3t, ((0, A_sub - A), (0, 0)))
        b3t = jnp.pad(b3t, ((0, A_sub - A), (0, 0)))

    n_tiles, tile_b, B_pad = _choose_tiling(B, tile_target, min_grid_steps)
    if B_pad != B:
        x = jnp.pad(x, ((0, B_pad - B), (0, 0)))

    out_t = pl.pallas_call(
        policy_kernel,
        out_shape=jax.ShapeDtypeStruct((A_sub, B_pad), jnp.float32),
        grid=(n_tiles,),
        in_specs=[
            pl.BlockSpec((tile_b, D), lambda i: (i, 0)),   # x streamed per tile
            pl.BlockSpec((D, H), lambda i: (0, 0)),        # weights/biases resident
            pl.BlockSpec((1, H), lambda i: (0, 0)),
            pl.BlockSpec((H, H), lambda i: (0, 0)),
            pl.BlockSpec((1, H), lambda i: (0, 0)),
            pl.BlockSpec((A_sub, H), lambda i: (0, 0)),
            pl.BlockSpec((A_sub, 1), lambda i: (0, 0)),
        ],
        out_specs=pl.BlockSpec((A_sub, tile_b), lambda i: (0, i)),
        compiler_params=pltpu.CompilerParams(
            dimension_semantics=("parallel",),
            vmem_limit_bytes=32 * 1024 * 1024,
        ),
    )(x, w1, b1, w2, b2, w3t, b3t)

    # Cheap wrapper-side slice + transpose back to module layout (B, A).
    return out_t[:A, :B].T


def make_params(key, dim_input, hidden_size, num_actions):
    """Parameters matching PolicyNetwork.__init__ (num_mlp_layers=2, discrete)."""
    k1, k2, k3 = jax.random.split(key, 3)
    gain = 2.0 ** 0.5
    # PyTorch Linear weight is (out, in); MLP weights are stored transposed as
    # (in, out) for x @ W, the head is kept in (out, in) layout (feeds the NT
    # matmul directly).
    w1 = _orthogonal(k1, (hidden_size, dim_input), gain).T      # (D, H)
    b1 = jnp.zeros((1, hidden_size), jnp.float32)
    w2 = _orthogonal(k2, (hidden_size, hidden_size), gain).T    # (H, H)
    b2 = jnp.zeros((1, hidden_size), jnp.float32)
    w3t = _orthogonal(k3, (num_actions, hidden_size), 0.01)     # (A, H)
    b3t = jnp.zeros((num_actions, 1), jnp.float32)
    return w1, b1, w2, b2, w3t, b3t


def reference_logits(x, w1, b1, w2, b2, w3t, b3t):
    hp = jax.lax.Precision.HIGHEST
    h1 = jnp.tanh(jnp.dot(x, w1, precision=hp) + b1)
    h2 = jnp.tanh(jnp.dot(h1, w2, precision=hp) + b2)
    return jnp.dot(h2, w3t.T, precision=hp) + b3t[:, 0][None, :]


if __name__ == "__main__":
    # Module defaults: hidden_size=64, num_mlp_layers=2, discrete=True.
    D, H, A = 32, 64, 8
    key = jax.random.PRNGKey(0)
    kx, kp, kx2 = jax.random.split(key, 3)
    params = make_params(kp, dim_input=D, hidden_size=H, num_actions=A)

    # Small batch (single tile, no padding).
    B = 16
    x = jax.random.normal(kx, (B, D), dtype=jnp.float32)
    logits = jax.block_until_ready(policy_network_logits(x, *params))
    ref = reference_logits(x, *params)
    assert logits.shape == (B, A)
    assert jnp.allclose(logits, ref, atol=1e-4, rtol=1e-4), "single-tile mismatch"

    # Ragged batch exercising multi-tile grid + batch padding (min_grid_steps=2
    # mirrors the v7x two-TensorCore setting; harmless elsewhere).
    B2 = 300
    x2 = jax.random.normal(kx2, (B2, D), dtype=jnp.float32)
    logits2 = jax.block_until_ready(
        policy_network_logits(x2, *params, tile_target=256, min_grid_steps=2))
    ref2 = reference_logits(x2, *params)
    assert logits2.shape == (B2, A)
    assert jnp.allclose(logits2, ref2, atol=1e-4, rtol=1e-4), "multi-tile mismatch"

    # TODO(synk): OneHotDist / torch.distributions wrapper has no Pallas
    # equivalent; the kernel returns the logits that parametrize it.
    print("KERNEL_OK")
</pallas_src>

<mosaic_0001>
module attributes {stable_mosaic.version = 11 : i64} {
  func.func @policy_kernel(%arg0: i32, %arg1: memref<16x32xf32, #tpu.memory_space<vmem>>, %arg2: memref<32x64xf32, #tpu.memory_space<vmem>>, %arg3: memref<1x64xf32, #tpu.memory_space<vmem>>, %arg4: memref<64x64xf32, #tpu.memory_space<vmem>>, %arg5: memref<1x64xf32, #tpu.memory_space<vmem>>, %arg6: memref<8x64xf32, #tpu.memory_space<vmem>>, %arg7: memref<8x1xf32, #tpu.memory_space<vmem>>, %arg8: memref<8x16xf32, #tpu.memory_space<vmem>>) attributes {dimension_semantics = [#tpu.dimension_semantics<parallel>], iteration_bounds = array<i64: 1>, scalar_prefetch = 0 : i64, scratch_operands = 0 : i64, tpu.core_type = #tpu.core_type<tc>, window_params = [{transform_indices = @transform_0, window_bounds = array<i64: 16, 32>}, {pipeline_mode = #tpu.pipeline_mode<synchronous>, transform_indices = @transform_1, window_bounds = array<i64: 32, 64>}, {pipeline_mode = #tpu.pipeline_mode<synchronous>, transform_indices = @transform_2, window_bounds = array<i64: 1, 64>}, {pipeline_mode = #tpu.pipeline_mode<synchronous>, transform_indices = @transform_3, window_bounds = array<i64: 64, 64>}, {pipeline_mode = #tpu.pipeline_mode<synchronous>, transform_indices = @transform_4, window_bounds = array<i64: 1, 64>}, {pipeline_mode = #tpu.pipeline_mode<synchronous>, transform_indices = @transform_5, window_bounds = array<i64: 8, 64>}, {pipeline_mode = #tpu.pipeline_mode<synchronous>, transform_indices = @transform_6, window_bounds = array<i64: 8, 1>}, {transform_indices = @transform_7, window_bounds = array<i64: 8, 16>}]} {
    %c0 = arith.constant 0 : index
    %c0_0 = arith.constant 0 : index
    %0 = vector.load %arg1[%c0, %c0_0] : memref<16x32xf32, #tpu.memory_space<vmem>>, vector<16x32xf32>
    %c0_1 = arith.constant 0 : index
    %c0_2 = arith.constant 0 : index
    %1 = vector.load %arg2[%c0_1, %c0_2] : memref<32x64xf32, #tpu.memory_space<vmem>>, vector<32x64xf32>
    %cst = arith.constant dense<0.000000e+00> : vector<16x64xf32>
    %2 = tpu.matmul %0, %1, %cst {dimension_numbers = #tpu.dot_dimension_numbers<[1], [0], [0], [1], [0, 0, 1, 1], [], []>} : vector<16x32xf32>, vector<32x64xf32>, vector<16x64xf32> -> vector<16x64xf32>
    %c0_3 = arith.constant 0 : index
    %c0_4 = arith.constant 0 : index
    %3 = vector.load %arg3[%c0_3, %c0_4] : memref<1x64xf32, #tpu.memory_space<vmem>>, vector<1x64xf32>
    %4 = vector.broadcast %3 : vector<1x64xf32> to vector<16x64xf32>
    %5 = arith.addf %2, %4 : vector<16x64xf32>
    %6 = math.tanh %5 : vector<16x64xf32>
    %c0_5 = arith.constant 0 : index
    %c0_6 = arith.constant 0 : index
    %7 = vector.load %arg4[%c0_5, %c0_6] : memref<64x64xf32, #tpu.memory_space<vmem>>, vector<64x64xf32>
    %cst_7 = arith.constant dense<0.000000e+00> : vector<16x64xf32>
    %8 = tpu.matmul %6, %7, %cst_7 {dimension_numbers = #tpu.dot_dimension_numbers<[1], [0], [0], [1], [0, 0, 1, 1], [], []>} : vector<16x64xf32>, vector<64x64xf32>, vector<16x64xf32> -> vector<16x64xf32>
    %c0_8 = arith.constant 0 : index
    %c0_9 = arith.constant 0 : index
    %9 = vector.load %arg5[%c0_8, %c0_9] : memref<1x64xf32, #tpu.memory_space<vmem>>, vector<1x64xf32>
    %10 = vector.broadcast %9 : vector<1x64xf32> to vector<16x64xf32>
    %11 = arith.addf %8, %10 : vector<16x64xf32>
    %12 = math.tanh %11 : vector<16x64xf32>
    %c0_10 = arith.constant 0 : index
    %c0_11 = arith.constant 0 : index
    %13 = vector.load %arg6[%c0_10, %c0_11] : memref<8x64xf32, #tpu.memory_space<vmem>>, vector<8x64xf32>
    %cst_12 = arith.constant dense<0.000000e+00> : vector<8x16xf32>
    %14 = tpu.matmul %13, %12, %cst_12 {dimension_numbers = #tpu.dot_dimension_numbers<[1], [1], [0], [0], [0, 0, 1, 0], [], []>} : vector<8x64xf32>, vector<16x64xf32>, vector<8x16xf32> -> vector<8x16xf32>
    %c0_13 = arith.constant 0 : index
    %c0_14 = arith.constant 0 : index
    %15 = vector.load %arg7[%c0_13, %c0_14] : memref<8x1xf32, #tpu.memory_space<vmem>>, vector<8x1xf32>
    %16 = vector.broadcast %15 : vector<8x1xf32> to vector<8x16xf32>
    %17 = arith.addf %14, %16 : vector<8x16xf32>
    %c0_15 = arith.constant 0 : index
    %c0_16 = arith.constant 0 : index
    %18 = vector.load %arg8[%c0_15, %c0_16] : memref<8x16xf32, #tpu.memory_space<vmem>>, vector<8x16xf32>
    tpu.vector_store %arg8[%c0_15, %c0_16], %17 {strides = array<i32>} : memref<8x16xf32, #tpu.memory_space<vmem>>, vector<8x16xf32>,
    return
  }
  func.func @transform_0(%arg0: i32) -> (i32, i32) {
    %c0_i32 = arith.constant 0 : i32
    %c0_i32_0 = arith.constant 0 : i32
    return %arg0, %c0_i32 : i32, i32
  }
  func.func @transform_1(%arg0: i32) -> (i32, i32) {
    %c0_i32 = arith.constant 0 : i32
    %c0_i32_0 = arith.constant 0 : i32
    %c0_i32_1 = arith.constant 0 : i32
    return %c0_i32, %c0_i32_0 : i32, i32
  }
  func.func @transform_2(%arg0: i32) -> (i32, i32) {
    %c0_i32 = arith.constant 0 : i32
    %c0_i32_0 = arith.constant 0 : i32
    %c0_i32_1 = arith.constant 0 : i32
    return %c0_i32, %c0_i32_0 : i32, i32
  }
  func.func @transform_3(%arg0: i32) -> (i32, i32) {
    %c0_i32 = arith.constant 0 : i32
    %c0_i32_0 = arith.constant 0 : i32
    %c0_i32_1 = arith.constant 0 : i32
    return %c0_i32, %c0_i32_0 : i32, i32
  }
  func.func @transform_4(%arg0: i32) -> (i32, i32) {
    %c0_i32 = arith.constant 0 : i32
    %c0_i32_0 = arith.constant 0 : i32
    %c0_i32_1 = arith.constant 0 : i32
    return %c0_i32, %c0_i32_0 : i32, i32
  }
  func.func @transform_5(%arg0: i32) -> (i32, i32) {
    %c0_i32 = arith.constant 0 : i32
    %c0_i32_0 = arith.constant 0 : i32
    %c0_i32_1 = arith.constant 0 : i32
    return %c0_i32, %c0_i32_0 : i32, i32
  }
  func.func @transform_6(%arg0: i32) -> (i32, i32) {
    %c0_i32 = arith.constant 0 : i32
    %c0_i32_0 = arith.constant 0 : i32
    %c0_i32_1 = arith.constant 0 : i32
    return %c0_i32, %c0_i32_0 : i32, i32
  }
  func.func @transform_7(%arg0: i32) -> (i32, i32) {
    %c0_i32 = arith.constant 0 : i32
    %c0_i32_0 = arith.constant 0 : i32
    return %c0_i32, %arg0 : i32, i32
  }
}

</mosaic_0001>

<bundles_post_ra>
// kernel: policy_network_logits.1
= control target key start
LH: loop header
LB: loop body
LE: loop exit
PB: predicated region body
PF: predicated region fallthrough
CT: control target
= control target key end

     0   :  { %12 = vsyncpa [#allocation3], 0  ;;  %s617_s0 = inlined_call_operand.hbm [shape: f32[16,32], index: 0, kind: input, shape index: {}]   ;;  %s618_s1 = inlined_call_operand.hbm [shape: f32[32,64], index: 1, kind: input, shape index: {}]   ;;  %s619_s2 = inlined_call_operand.vmem [shape: f32[1,64], index: 2, kind: input, shape index: {}]   ;;  %s620_s3 = inlined_call_operand.hbm [shape: f32[64,64], index: 3, kind: input, shape index: {}]   ;;  %s621_s4 = inlined_call_operand.vmem [shape: f32[1,64], index: 4, kind: input, shape index: {}]   ;;  %s622_s5 = inlined_call_operand.vmem [shape: f32[8,64], index: 5, kind: input, shape index: {}]   ;;  %s623_s6 = inlined_call_operand.vmem [shape: f32[8,1], index: 6, kind: input, shape index: {}]   ;;  %s624_s7 = inlined_call_operand.hbm [shape: f32[8,16], index: 7, kind: output, shape index: {}]  }
   0x1   :  { %13 = vsyncpa [#allocation6], 0 }
   0x2   :  { %14 = vsyncpa [#allocation4], 0  ;;  %s537_s24 = smov [#allocation5]   ;;  %s538_s26 = smov [#allocation2]  }
   0x3   :  { %s32_s25 = sshll.u32 %s537_s24, 4  ;;  %s20_s27 = sshll.u32 %s538_s26, 4  ;;  %s33_s25 = int_to_ptr.vmem [resolvable:$true] %s32_s25  ;;  %s21_s27 = int_to_ptr.vmem [resolvable:$true] %s20_s27 }
   0x4   :  { %s459_s28 = scalar_lea.vmem %s33_s25, 512  ;;  %p464_p1 = scmp.lt.s32.totalorder %s33_s25, %s33_s25 }
   0x5   :  { %p460_p0 = scmp.ne.s32.totalorder %s33_s25, %s459_s28  ;;  %p465_p2 = scmp.lt.s32.totalorder %s459_s28, %s459_s28 }
   0x7   :  { %p466_p3 = por %p465_p2, %p464_p1 }
   0x9   :  { %p467_p4 = pnand %p466_p3, %p460_p0 }
   0xb   :  { %470 = shalt.err (!%p467_p4)
}
   0xc   :  { %s539_s29 = smov 128   ;;  %s540_s30 = smov 8  }
   0xd   :  { %38 = dma.hbm_to_vmem [thread:$0]  %s618_s1, 512, %s33_s25, [#allocation6], %s539_s29, %s539_s29, %s540_s30  }
   0xe   :  { %s479_s10 = scalar_lea.vmem %s21_s27, 256  ;;  %p484_p6 = scmp.lt.s32.totalorder %s21_s27, %s21_s27 }
   0xf   :  { %p480_p5 = scmp.ne.s32.totalorder %s21_s27, %s479_s10  ;;  %p485_p7 = scmp.lt.s32.totalorder %s479_s10, %s479_s10 }
  0x11   :  { %p486_p8 = por %p485_p7, %p484_p6 }
  0x13   :  { %p487_p9 = pnand %p486_p8, %p480_p5 }
  0x15   :  { %490 = shalt.err (!%p487_p9)
}
  0x16   :  { %26 = dma.hbm_to_vmem [thread:$0]  %s617_s0, 256, %s21_s27, [#allocation3], %s539_s29, %s539_s29, %s540_s30  }
  0x17   :  { %s541_s13 = smov [#allocation7]  }
  0x18   :  { %s46_s14 = sshll.u32 %s541_s13, 4  ;;  %s47_s14 = int_to_ptr.vmem [resolvable:$true] %s46_s14 }
  0x19   :  { %s499_s15 = scalar_lea.vmem %s47_s14, 1024  ;;  %p504_p11 = scmp.lt.s32.totalorder %s47_s14, %s47_s14 }
  0x1a   :  { %p500_p10 = scmp.ne.s32.totalorder %s47_s14, %s499_s15  ;;  %p505_p12 = scmp.lt.s32.totalorder %s499_s15, %s499_s15 }
  0x1c   :  { %p506_p13 = por %p505_p12, %p504_p11 }
  0x1e   :  { %p507_p0 = pnand %p506_p13, %p500_p10 }
  0x20   :  { %510 = shalt.err (!%p507_p0)
}
  0x21   :  { %52 = dma.hbm_to_vmem [thread:$0]  %s620_s3, 1024, %s47_s14, [#allocation6], %s539_s29, %s539_s29, %s540_s30  }
  0x22   :  { %531 = dma.done.wait [#allocation3], 256  }
  0x23   :  { %532 = vsyncadd [#allocation3], 4294967040 }
  0x24   :  { %533 = dma.done.wait [#allocation6], 1536  }
  0x25   :  { %534 = vsyncadd [#allocation6], 4294965760  ;;  %vm81_vm0 = vcmask 261120   ;;  %v73_v0 = vld [vmem:[#allocation5 + $0x18] sm:$0xff]  ;;  %v72_v1 = vld [vmem:[#allocation5 + $0x10] sm:$0xff]  ;;  %vm180_vm1 = vcmask 523264  }
  0x26   :  { %396 = vmatprep.subr.mxu0 %v73_v0  ;;  %v68_v2 = vld [vmem:[#allocation2] sm:$0xff]  ;;  %v71_v3 = vld [vmem:[#allocation5 + $0x8] sm:$0xff]  ;;  %v70_v4 = vld [vmem:[#allocation5] sm:$0xff]  ;;  %v542_v21 = vmov 0.0   ;;  %vm543_vm2 = vmmov 0   ;;  %v544_v23 = vmov 0  }
  0x27   :  { %397 = vmatpush3.msra.mxu0 %v73_v0  ;;  %404 = vmatprep.mubr.msk.f32.mxu0 %vm81_vm0, %v68_v2  ;;  %v69_v5 = vld [vmem:[#allocation2 + $0x8] sm:$0xff]  ;;  %v171_v7 = vld [vmem:[#allocation7 + $0x30] sm:$0xff]  ;;  %v170_v8 = vld [vmem:[#allocation7 + $0x28] sm:$0xff]  ;;  %vm350_vm3 = vcmask 130048  }
  0x28   :  { %398 = vmatprep.subr.mxu0 %v72_v1  ;;  %v172_v6 = vld [vmem:[#allocation7 + $0x38] sm:$0xff]  ;;  %v169_v9 = vld [vmem:[#allocation7 + $0x20] sm:$0xff]  ;;  %v167_v11 = vld [vmem:[#allocation7 + $0x10] sm:$0xff]  ;;  %442 = vset.pattern.permute.xlu0 %v544_v23 }
  0x29   :  { %399 = vmatpush3.msra.mxu0 %v72_v1  ;;  %407 = vmatprep.subr.mxu1 %v172_v6  ;;  %v168_v10 = vld [vmem:[#allocation7 + $0x18] sm:$0xff]  ;;  %v166_v12 = vld [vmem:[#allocation7 + $0x8] sm:$0xff]  ;;  %v165_v13 = vld [vmem:[#allocation7] sm:$0xff] }
  0x2a   :  { %400 = vmatprep.subr.mxu0 %v71_v3  ;;  %408 = vmatpush3.msra.mxu1 %v172_v6  ;;  %v368_v14 = vld [vmem:[%s619_s2] ss:$0 sm:$0xff] }
  0x2b   :  { %401 = vmatpush3.msra.mxu0 %v71_v3  ;;  %409 = vmatprep.subr.mxu1 %v171_v7  ;;  %v265_v22 = vld [vmem:[%s623_s6] sm:$0xff] }
  0x2c   :  { %402 = vmatprep.subr.mxu0 %v70_v4  ;;  %410 = vmatpush3.msra.mxu1 %v171_v7  ;;  %v371_v24 = vld [vmem:[%s621_s4] ss:$0 sm:$0xff]  ;;  %s545_s4 = smov [#allocation8]  }
  0x2d   :  { %403 = vmatpush3.msra.mxu0 %v70_v4  ;;  %411 = vmatprep.subr.mxu1 %v170_v8  ;;  %v264_v31 = vld [vmem:[%s622_s5] sm:$0xff]  ;;  %s358_s21 = sshll.u32 %s545_s4, 4  ;;  %s359_s21 = int_to_ptr.vmem [resolvable:$true] %s358_s21 }
  0x2e   :  { %405 = vmatmul.mubr.msk.f32.vlgmr.msra.gmra.mxu0 %vm81_vm0, %v69_v5  ;;  %412 = vmatpush3.msra.mxu1 %v170_v8  ;;  %s511_s22 = scalar_lea.vmem %s359_s21, 128  ;;  %p516_p2 = scmp.lt.s32.totalorder %s359_s21, %s359_s21 }
  0x2f   :  { %413 = vmatprep.subr.mxu1 %v169_v9  ;;  %426 = vmatprep.subr.mxu0 %v542_v21  ;;  %p512_p1 = scmp.ne.s32.totalorder %s359_s21, %s511_s22  ;;  %p517_p3 = scmp.lt.s32.totalorder %s511_s22, %s511_s22 }
  0x30   :  { %414 = vmatpush3.msra.mxu1 %v169_v9  ;;  %430 = vmatprep.mubr.msk.f32.mxu0 %vm543_vm2, %v542_v21 }
  0x31   :  { %415 = vmatprep.subr.mxu1 %v168_v10  ;;  %268 = vperm.xlu0 %442, %v265_v22   ;;  %p518_p4 = por %p517_p3, %p516_p2 }
  0x32   :  { %416 = vmatpush3.msra.mxu1 %v168_v10 }
  0x33   :  { %417 = vmatprep.subr.mxu1 %v167_v11  ;;  %p519_p5 = pnand %p518_p4, %p512_p1 }
  0x34   :  { %418 = vmatpush3.msra.mxu1 %v167_v11 }
  0x35   :  { %419 = vmatprep.subr.mxu1 %v166_v12 }
  0x36   :  { %420 = vmatpush3.msra.mxu1 %v166_v12 }
  0x37   :  { %421 = vmatprep.subr.mxu1 %v165_v13 }
  0x38   :  { %422 = vmatpush3.msra.mxu1 %v165_v13 }
  0xac   :  { %v269_v32 = vpop.permute.xlu0 %268 }
  0xee   :  { %v406_v15 = vpop.f32.mrf.mxu0 }
  0xef   :  { %v160_v16 = vadd.f32 %v406_v15, %v368_v14 }
  0xf0   :  { %v154_v17 = vpop.f32.mrf.mxu0 }
  0xf1   :  { %v155_v18 = vadd.f32 %v368_v14, %v154_v17 }
  0xf3   :  { %443 = vtanh.f32 %v155_v18 }
  0xf4   :  { %445 = vtanh.f32 %v160_v16 }
 0x100   :  { %v444_v19 = vpop.eup %443 }
 0x101   :  { %v446_v20 = vpop.eup %445  ;;  %423 = vmatprep.mubr.msk.f32.mxu1 %vm180_vm1, %v444_v19 }
 0x102   :  { %424 = vmatmul.mubr.msk.f32.vlgmr.msra.gmra.mxu1 %vm180_vm1, %v446_v20 }
 0x1c2   :  { %v425_v25 = vpop.f32.mrf.mxu1 }
 0x1c3   :  { %v259_v26 = vadd.f32 %v425_v25, %v371_v24 }
 0x1c4   :  { %v253_v27 = vpop.f32.mrf.mxu1 }
 0x1c5   :  { %447 = vtanh.f32 %v259_v26  ;;  %v254_v28 = vadd.f32 %v371_v24, %v253_v27 }
 0x1c7   :  { %449 = vtanh.f32 %v254_v28 }
 0x1d2   :  { %v448_v29 = vpop.eup %447 }
 0x1d3   :  { %427 = vmatpush3.xpose.msk.msra.mxu0 %vm180_vm1, %v448_v29 }
 0x1d4   :  { %428 = vmatprep.subr.mxu0 %v542_v21  ;;  %v450_v30 = vpop.eup %449 }
 0x1d7   :  { %429 = vmatpush3.xpose.msk.msra.mxu0 %vm180_vm1, %v450_v30 }
 0x1da   :  { %431 = vmatmul.mubr.msk.f32.vlgmr.msra.gmra.mxu0 %vm180_vm1, %v264_v31 }
 0x29a   :  { %v346_v33 = vpop.f32.mrf.mxu0 }
 0x29b   :  { %v347_v34 = vadd.f32 %v346_v33, %v269_v32 }
 0x29c   :  { %v432_v35 = vpop.f32.mrf.mxu0 }
 0x29d   :  { %351 = vst.msk [vmem:[#allocation8] sm:$0xff] %vm350_vm3, %v347_v34 }
 0x29e   :  { %522 = shalt.err (!%p519_p5)
}
 0x29f   :  { %361 = dma.vmem_to_hbm [thread:$0]  %s359_s21, 128, %s624_s7, [#allocation4]  }
 0x2a0   :  { %535 = dma.done.wait [#allocation4], 128  }
 0x2a1   :  { %536 = vsyncadd [#allocation4], 4294967168 }
 0x2a2   :  { %365 = vsyncpa [#allocation3], 1 }
 0x2a3   :  { %366 = vsyncpa [#allocation6], 1 }
 0x2a4   :  { %367 = vsyncpa [#allocation4], 1 }

</bundles_post_ra>
